<compile_context>
chip_gen: v5e
topology: v5e:2x2
jax: 0.10.0
libtpu: 0.0.40
codegen_flags: <defaults>
</compile_context>

<pallas_src>
import functools

import jax
import jax.numpy as jnp
from jax import lax
from jax.experimental import pallas as pl
from jax.experimental.pallas import tpu as pltpu


def _mish(x):
    # Mish(x) = x * tanh(softplus(x)) with torch's softplus threshold (20).
    # For x <= 20: tanh(log(1+e^x)) == ((1+e^x)^2 - 1) / ((1+e^x)^2 + 1)
    #   -> 1 exp (EUP) + 1 approx reciprocal (EUP) + cheap VPU ops.
    # For x > 20: softplus(x) ~= x and tanh(x) == 1.0 in f32, so Mish(x) == x.
    e = jnp.exp(jnp.minimum(x, 20.0))
    n = (1.0 + e) * (1.0 + e)
    d = n + 1.0
    r = pl.reciprocal(d, approx=True)
    r = r * (2.0 - d * r)            # one Newton step: ~f32 accuracy, VPU-only
    y = x * (n - 1.0) * r
    return jnp.where(x > 20.0, x, y)


def _fused_encoder_kernel(*refs, cfgs, lens, stage_dtype):
    """Fused Conv1d+Mish chain for ONE batch element (one grid step).

    refs = (x, w_0, b_0, ..., w_{n-1}, b_{n-1}, out, s_0, ..., s_{n-1})
      x:   (1, C_0, L_0)        channels on sublanes, length on lanes
      w_i: (C_{i+1}, k_i*C_i)   stacked-tap weight, resident in VMEM
      b_i: (C_{i+1}, 1)         f32 bias
      out: (1, C_n, L_n)
      s_i: VMEM scratch (k_i*C_i, L_{i+1}) — stacked shifted-input RHS
    """
    n = len(cfgs)
    x_ref = refs[0]
    w_refs = [refs[1 + 2 * i] for i in range(n)]
    b_refs = [refs[2 + 2 * i] for i in range(n)]
    out_ref = refs[1 + 2 * n]
    s_refs = list(refs[2 + 2 * n:])

    cur = x_ref[0].astype(jnp.float32)                 # (C_0, L_0)
    for i, (cin, cout, ksize, pad) in enumerate(cfgs):
        l_in, l_out = lens[i], lens[i + 1]
        s_ref = s_refs[i]                              # (k*cin, l_out)

        # Build the stacked RHS: block t holds x_padded[:, t : t + l_out].
        # Only the halo columns (outside the valid window) are zeroed, every
        # grid step (megacore-safe; never gated on program_id).
        for t in range(ksize):
            dst_lo = max(0, pad - t)
            dst_hi = min(l_out, l_in + pad - t)
            src_lo = max(0, t - pad)
            row0 = t * cin
            if dst_lo > 0:
                s_ref[row0:row0 + cin, 0:dst_lo] = jnp.zeros(
                    (cin, dst_lo), stage_dtype)
            if dst_hi < l_out:
                s_ref[row0:row0 + cin, dst_hi:l_out] = jnp.zeros(
                    (cin, l_out - dst_hi), stage_dtype)
            if dst_hi > dst_lo:
                length = dst_hi - dst_lo
                s_ref[row0:row0 + cin, dst_lo:dst_hi] = (
                    cur[:, src_lo:src_lo + length].astype(stage_dtype))

        # One MXU matmul per layer (contraction depth k*cin), f32 accumulate.
        y = jnp.dot(w_refs[i][...], s_refs[i][...],
                    preferred_element_type=jnp.float32)   # (cout, l_out)
        y = y + b_refs[i][...]                             # (cout, 1) broadcast
        cur = _mish(y)

    out_ref[0] = cur.astype(out_ref.dtype)


def _round_up(x, m):
    return (x + m - 1) // m * m


def _padded_bytes(shape, dtype):
    """VMEM footprint of a buffer after (sublane, lane) tile padding."""
    itemsize = jnp.dtype(dtype).itemsize
    sub = 8 * (4 // itemsize) if itemsize < 4 else 8      # f32:8, bf16:16
    if len(shape) == 1:
        lead, s, l = 1, 1, shape[0]
    else:
        *head, s, l = shape
        lead = 1
        for d in head:
            lead *= d
    return lead * _round_up(max(s, 1), sub) * _round_up(max(l, 1), 128) * itemsize


def _vmem_cap_bytes():
    # Generation-aware cap: ~85% of physical VMEM (64 MiB v7x, 128 MiB v5e/v6e).
    try:
        cap = int(getattr(pltpu.get_tpu_info(), "vmem_capacity_bytes"))
    except Exception:
        cap = 64 * 1024 * 1024            # conservative fallback (v7x)
    return max(int(cap * 0.85), 32 * 1024 * 1024)


def _estimate_vmem_bytes(c0, l0, cfgs, lens, x_dtype, stage_dtype):
    total = 0
    # double-buffered input / output blocks (one batch element each)
    total += 2 * _padded_bytes((1, c0, l0), x_dtype)
    total += 2 * _padded_bytes((1, cfgs[-1][1], lens[-1]), x_dtype)
    # weights + biases (constant index_map; budget double-buffered)
    for (cin, cout, k, _pad) in cfgs:
        total += 2 * (_padded_bytes((cout, k * cin), stage_dtype)
                      + _padded_bytes((cout, 1), jnp.float32))
    # stacked-RHS scratch + live f32 activation per layer
    for i, (cin, cout, k, _pad) in enumerate(cfgs):
        total += _padded_bytes((k * cin, lens[i + 1]), stage_dtype)
        total += _padded_bytes((cout, lens[i + 1]), jnp.float32)
    return total


def encoder_forward_pallas(x_ncl, weights, biases, cfgs, *,
                           stage_dtype=jnp.float32, vmem_limit_bytes=None):
    """x_ncl: (B, C_0, L_0). weights[i]: (C_{i+1}, k_i*C_i). biases[i]: (C_{i+1}, 1)."""
    B, c0, l0 = x_ncl.shape
    assert cfgs[0][0] == c0, "input channel mismatch"

    lens = [l0]
    for (_cin, _cout, k, pad) in cfgs:
        lens.append(lens[-1] + 2 * pad - k + 1)
    cout_last, l_last = cfgs[-1][1], lens[-1]

    in_specs = [pl.BlockSpec((1, c0, l0), lambda b: (b, 0, 0))]
    operands = [x_ncl]
    for w, bvec, (cin, cout, k, _pad) in zip(weights, biases, cfgs):
        in_specs.append(pl.BlockSpec((cout, k * cin), lambda b: (0, 0)))
        in_specs.append(pl.BlockSpec((cout, 1), lambda b: (0, 0)))
        operands.append(w)
        operands.append(bvec)

    scratch_shapes = [
        pltpu.VMEM((k * cin, lens[i + 1]), stage_dtype)
        for i, (cin, _cout, k, _pad) in enumerate(cfgs)
    ]

    if vmem_limit_bytes is None:
        est = _estimate_vmem_bytes(c0, l0, cfgs, lens, x_ncl.dtype, stage_dtype)
        vmem_limit_bytes = min(_vmem_cap_bytes(),
                               max(32 * 1024 * 1024, int(est * 1.5)))

    kernel = functools.partial(
        _fused_encoder_kernel,
        cfgs=tuple(cfgs),
        lens=tuple(lens),
        stage_dtype=stage_dtype,
    )

    return pl.pallas_call(
        kernel,
        out_shape=jax.ShapeDtypeStruct((B, cout_last, l_last), x_ncl.dtype),
        grid=(B,),
        in_specs=in_specs,
        out_specs=pl.BlockSpec((1, cout_last, l_last), lambda b: (b, 0, 0)),
        scratch_shapes=scratch_shapes,
        compiler_params=pltpu.CompilerParams(
            dimension_semantics=("parallel",),
            vmem_limit_bytes=vmem_limit_bytes,
        ),
    )(*operands)


class EncoderPallas:
    """Mirror of the PyTorch Encoder: x -> Mish(Conv1d(x)) chained, fused into
    a single Pallas kernel call."""

    def __init__(self, convs, key, stage_dtype=jnp.float32):
        # stage_dtype=jnp.bfloat16 halves weight / staged-RHS VMEM and makes
        # the MXU matmul single-pass on v6e/v7x; accumulation stays f32.
        self.stage_dtype = stage_dtype
        self.cfgs = []            # (cin, cout, k, pad) per layer
        self.weights = []         # (C_out, k*C_in) stacked-tap layout
        self.biases = []          # (C_out, 1) f32
        self._torch_weights = []  # (C_out, C_in, k) for the lax reference
        for i, cfg in enumerate(convs):
            cin = cfg["in_channels"]
            cout = cfg["out_channels"]
            k = cfg["kernel_size"]
            pad = cfg.get("padding", 0)
            if (cfg.get("stride", 1) != 1 or cfg.get("dilation", 1) != 1
                    or cfg.get("groups", 1) != 1):
                # TODO(synk): strided / dilated / grouped Conv1d not implemented.
                raise NotImplementedError("only stride=1, dilation=1, groups=1")
            kw, kb = jax.random.split(jax.random.fold_in(key, i))
            bound = 1.0 / (cin * k) ** 0.5
            w_oik = jax.random.uniform(
                kw, (cout, cin, k), jnp.float32, minval=-bound, maxval=bound)
            if cfg.get("bias", True):
                b = jax.random.uniform(
                    kb, (cout,), jnp.float32, minval=-bound, maxval=bound)
            else:
                b = jnp.zeros((cout,), jnp.float32)
            self.cfgs.append((cin, cout, k, pad))
            self._torch_weights.append(w_oik)
            # Stacked-tap layout, built ONCE: column block t == W[:, :, t].
            w2d = jnp.transpose(w_oik, (0, 2, 1)).reshape(cout, k * cin)
            self.weights.append(w2d.astype(stage_dtype))
            self.biases.append(b.reshape(cout, 1).astype(jnp.float32))

    def __call__(self, x_ncl, *, vmem_limit_bytes=None):
        # PyTorch NCL is already the lane-dense layout the kernel wants.
        return encoder_forward_pallas(
            x_ncl, self.weights, self.biases, self.cfgs,
            stage_dtype=self.stage_dtype, vmem_limit_bytes=vmem_limit_bytes)

    def reference(self, x_ncl):
        # pure-JAX reference (lax conv + canonical Mish) for correctness checks
        x = x_ncl
        for w_oik, b2d, (_cin, _cout, _k, pad) in zip(
                self._torch_weights, self.biases, self.cfgs):
            y = lax.conv_general_dilated(
                x, w_oik,
                window_strides=(1,),
                padding=[(pad, pad)],
                dimension_numbers=("NCH", "OIH", "NCH"),
            )
            y = y + b2d[None, :, :]
            sp = jnp.where(y > 20.0, y, jnp.log1p(jnp.exp(jnp.minimum(y, 20.0))))
            x = y * jnp.tanh(sp)
        return x


if __name__ == "__main__":
    convs = [
        {"in_channels": 4, "out_channels": 8, "kernel_size": 3, "padding": 1},
        {"in_channels": 8, "out_channels": 16, "kernel_size": 3, "padding": 1},
    ]

    key = jax.random.PRNGKey(0)
    k_x, k_p = jax.random.split(key)

    B, C, L = 2, 4, 16
    x = jax.random.normal(k_x, (B, C, L), dtype=jnp.float32)

    enc = EncoderPallas(convs, k_p)

    out = jax.block_until_ready(enc(x))
    ref = jax.block_until_ready(enc.reference(x))

    assert out.shape == ref.shape == (B, convs[-1]["out_channels"], L)
    assert jnp.allclose(out, ref, atol=1e-4, rtol=1e-4), (
        "mismatch vs reference, max abs err = %g"
        % float(jnp.max(jnp.abs(out - ref)))
    )

    print("KERNEL_OK")
</pallas_src>

<mosaic_0001>
module attributes {stable_mosaic.version = 11 : i64} {
  func.func @_fused_encoder_kernel(%arg0: i32, %arg1: memref<1x4x16xf32, #tpu.memory_space<vmem>>, %arg2: memref<8x12xf32, #tpu.memory_space<vmem>>, %arg3: memref<8x1xf32, #tpu.memory_space<vmem>>, %arg4: memref<16x24xf32, #tpu.memory_space<vmem>>, %arg5: memref<16x1xf32, #tpu.memory_space<vmem>>, %arg6: memref<1x16x16xf32, #tpu.memory_space<vmem>>, %arg7: memref<12x16xf32, #tpu.memory_space<vmem>>, %arg8: memref<24x16xf32, #tpu.memory_space<vmem>>) attributes {dimension_semantics = [#tpu.dimension_semantics<parallel>], iteration_bounds = array<i64: 2>, scalar_prefetch = 0 : i64, scratch_operands = 2 : i64, tpu.core_type = #tpu.core_type<tc>, window_params = [{transform_indices = @transform_0, window_bounds = array<i64: 1, 4, 16>}, {pipeline_mode = #tpu.pipeline_mode<synchronous>, transform_indices = @transform_1, window_bounds = array<i64: 8, 12>}, {pipeline_mode = #tpu.pipeline_mode<synchronous>, transform_indices = @transform_2, window_bounds = array<i64: 8, 1>}, {pipeline_mode = #tpu.pipeline_mode<synchronous>, transform_indices = @transform_3, window_bounds = array<i64: 16, 24>}, {pipeline_mode = #tpu.pipeline_mode<synchronous>, transform_indices = @transform_4, window_bounds = array<i64: 16, 1>}, {transform_indices = @transform_5, window_bounds = array<i64: 1, 16, 16>}]} {
    %c0 = arith.constant 0 : index
    %c0_0 = arith.constant 0 : index
    %c0_1 = arith.constant 0 : index
    %0 = vector.load %arg1[%c0, %c0_0, %c0_1] : memref<1x4x16xf32, #tpu.memory_space<vmem>>, vector<1x4x16xf32>
    %1 = vector.shape_cast %0 : vector<1x4x16xf32> to vector<4x16xf32>
    %cst = arith.constant 0.000000e+00 : f32
    %2 = vector.broadcast %cst : f32 to vector<4x1xf32>
    %c0_2 = arith.constant 0 : index
    %c0_3 = arith.constant 0 : index
    %3 = vector.load %arg7[%c0_2, %c0_3] : memref<12x16xf32, #tpu.memory_space<vmem>>, vector<4x1xf32>
    tpu.vector_store %arg7[%c0_2, %c0_3], %2 {strides = array<i32>} : memref<12x16xf32, #tpu.memory_space<vmem>>, vector<4x1xf32>,
    %4 = vector.extract_strided_slice %1 {offsets = [0, 0], sizes = [4, 15], strides = [1, 1]} : vector<4x16xf32> to vector<4x15xf32>
    %c0_4 = arith.constant 0 : index
    %c1 = arith.constant 1 : index
    %5 = vector.load %arg7[%c0_4, %c1] : memref<12x16xf32, #tpu.memory_space<vmem>>, vector<4x15xf32>
    tpu.vector_store %arg7[%c0_4, %c1], %4 {strides = array<i32>} : memref<12x16xf32, #tpu.memory_space<vmem>>, vector<4x15xf32>,
    %c4 = arith.constant 4 : index
    %c0_5 = arith.constant 0 : index
    %6 = vector.load %arg7[%c4, %c0_5] : memref<12x16xf32, #tpu.memory_space<vmem>>, vector<4x16xf32>
    tpu.vector_store %arg7[%c4, %c0_5], %1 {strides = array<i32>} : memref<12x16xf32, #tpu.memory_space<vmem>>, vector<4x16xf32>,
    %cst_6 = arith.constant 0.000000e+00 : f32
    %7 = vector.broadcast %cst_6 : f32 to vector<4x1xf32>
    %c8 = arith.constant 8 : index
    %c15 = arith.constant 15 : index
    %8 = vector.load %arg7[%c8, %c15] : memref<12x16xf32, #tpu.memory_space<vmem>>, vector<4x1xf32>
    tpu.vector_store %arg7[%c8, %c15], %7 {strides = array<i32>} : memref<12x16xf32, #tpu.memory_space<vmem>>, vector<4x1xf32>,
    %9 = vector.extract_strided_slice %1 {offsets = [0, 1], sizes = [4, 15], strides = [1, 1]} : vector<4x16xf32> to vector<4x15xf32>
    %c8_7 = arith.constant 8 : index
    %c0_8 = arith.constant 0 : index
    %10 = vector.load %arg7[%c8_7, %c0_8] : memref<12x16xf32, #tpu.memory_space<vmem>>, vector<4x15xf32>
    tpu.vector_store %arg7[%c8_7, %c0_8], %9 {strides = array<i32>} : memref<12x16xf32, #tpu.memory_space<vmem>>, vector<4x15xf32>,
    %c0_9 = arith.constant 0 : index
    %c0_10 = arith.constant 0 : index
    %11 = vector.load %arg2[%c0_9, %c0_10] : memref<8x12xf32, #tpu.memory_space<vmem>>, vector<8x12xf32>
    %c0_11 = arith.constant 0 : index
    %c0_12 = arith.constant 0 : index
    %12 = vector.load %arg7[%c0_11, %c0_12] : memref<12x16xf32, #tpu.memory_space<vmem>>, vector<12x16xf32>
    %cst_13 = arith.constant dense<0.000000e+00> : vector<8x16xf32>
    %13 = tpu.matmul %11, %12, %cst_13 {dimension_numbers = #tpu.dot_dimension_numbers<[1], [0], [0], [1], [0, 0, 1, 1], [], []>} : vector<8x12xf32>, vector<12x16xf32>, vector<8x16xf32> -> vector<8x16xf32>
    %c0_14 = arith.constant 0 : index
    %c0_15 = arith.constant 0 : index
    %14 = vector.load %arg3[%c0_14, %c0_15] : memref<8x1xf32, #tpu.memory_space<vmem>>, vector<8x1xf32>
    %15 = vector.broadcast %14 : vector<8x1xf32> to vector<8x16xf32>
    %16 = arith.addf %13, %15 : vector<8x16xf32>
    %cst_16 = arith.constant 2.000000e+01 : f32
    %17 = vector.broadcast %cst_16 : f32 to vector<8x16xf32>
    %18 = arith.minimumf %16, %17 : vector<8x16xf32>
    %19 = math.exp %18 : vector<8x16xf32>
    %cst_17 = arith.constant 1.000000e+00 : f32
    %20 = vector.broadcast %cst_17 : f32 to vector<8x16xf32>
    %21 = arith.addf %20, %19 : vector<8x16xf32>
    %cst_18 = arith.constant 1.000000e+00 : f32
    %22 = vector.broadcast %cst_18 : f32 to vector<8x16xf32>
    %23 = arith.addf %22, %19 : vector<8x16xf32>
    %24 = arith.mulf %21, %23 : vector<8x16xf32>
    %cst_19 = arith.constant 1.000000e+00 : f32
    %25 = vector.broadcast %cst_19 : f32 to vector<8x16xf32>
    %26 = arith.addf %24, %25 : vector<8x16xf32>
    %27 = tpu.reciprocal %26 {approx = true} : vector<8x16xf32> -> vector<8x16xf32>
    %28 = arith.mulf %26, %27 : vector<8x16xf32>
    %cst_20 = arith.constant 2.000000e+00 : f32
    %29 = vector.broadcast %cst_20 : f32 to vector<8x16xf32>
    %30 = arith.subf %29, %28 : vector<8x16xf32>
    %31 = arith.mulf %27, %30 : vector<8x16xf32>
    %cst_21 = arith.constant 1.000000e+00 : f32
    %32 = vector.broadcast %cst_21 : f32 to vector<8x16xf32>
    %33 = arith.subf %24, %32 : vector<8x16xf32>
    %34 = arith.mulf %16, %33 : vector<8x16xf32>
    %35 = arith.mulf %34, %31 : vector<8x16xf32>
    %cst_22 = arith.constant 2.000000e+01 : f32
    %36 = vector.broadcast %cst_22 : f32 to vector<8x16xf32>
    %37 = arith.cmpf ogt, %16, %36 : vector<8x16xf32>
    %38 = arith.select %37, %16, %35 : vector<8x16xi1>, vector<8x16xf32>
    %cst_23 = arith.constant 0.000000e+00 : f32
    %39 = vector.broadcast %cst_23 : f32 to vector<8x1xf32>
    %c0_24 = arith.constant 0 : index
    %c0_25 = arith.constant 0 : index
    %40 = vector.load %arg8[%c0_24, %c0_25] : memref<24x16xf32, #tpu.memory_space<vmem>>, vector<8x1xf32>
    tpu.vector_store %arg8[%c0_24, %c0_25], %39 {strides = array<i32>} : memref<24x16xf32, #tpu.memory_space<vmem>>, vector<8x1xf32>,
    %41 = vector.extract_strided_slice %38 {offsets = [0, 0], sizes = [8, 15], strides = [1, 1]} : vector<8x16xf32> to vector<8x15xf32>
    %c0_26 = arith.constant 0 : index
    %c1_27 = arith.constant 1 : index
    %42 = vector.load %arg8[%c0_26, %c1_27] : memref<24x16xf32, #tpu.memory_space<vmem>>, vector<8x15xf32>
    tpu.vector_store %arg8[%c0_26, %c1_27], %41 {strides = array<i32>} : memref<24x16xf32, #tpu.memory_space<vmem>>, vector<8x15xf32>,
    %c8_28 = arith.constant 8 : index
    %c0_29 = arith.constant 0 : index
    %43 = vector.load %arg8[%c8_28, %c0_29] : memref<24x16xf32, #tpu.memory_space<vmem>>, vector<8x16xf32>
    tpu.vector_store %arg8[%c8_28, %c0_29], %38 {strides = array<i32>} : memref<24x16xf32, #tpu.memory_space<vmem>>, vector<8x16xf32>,
    %cst_30 = arith.constant 0.000000e+00 : f32
    %44 = vector.broadcast %cst_30 : f32 to vector<8x1xf32>
    %c16 = arith.constant 16 : index
    %c15_31 = arith.constant 15 : index
    %45 = vector.load %arg8[%c16, %c15_31] : memref<24x16xf32, #tpu.memory_space<vmem>>, vector<8x1xf32>
    tpu.vector_store %arg8[%c16, %c15_31], %44 {strides = array<i32>} : memref<24x16xf32, #tpu.memory_space<vmem>>, vector<8x1xf32>,
    %46 = vector.extract_strided_slice %38 {offsets = [0, 1], sizes = [8, 15], strides = [1, 1]} : vector<8x16xf32> to vector<8x15xf32>
    %c16_32 = arith.constant 16 : index
    %c0_33 = arith.constant 0 : index
    %47 = vector.load %arg8[%c16_32, %c0_33] : memref<24x16xf32, #tpu.memory_space<vmem>>, vector<8x15xf32>
    tpu.vector_store %arg8[%c16_32, %c0_33], %46 {strides = array<i32>} : memref<24x16xf32, #tpu.memory_space<vmem>>, vector<8x15xf32>,
    %c0_34 = arith.constant 0 : index
    %c0_35 = arith.constant 0 : index
    %48 = vector.load %arg4[%c0_34, %c0_35] : memref<16x24xf32, #tpu.memory_space<vmem>>, vector<16x24xf32>
    %c0_36 = arith.constant 0 : index
    %c0_37 = arith.constant 0 : index
    %49 = vector.load %arg8[%c0_36, %c0_37] : memref<24x16xf32, #tpu.memory_space<vmem>>, vector<24x16xf32>
    %cst_38 = arith.constant dense<0.000000e+00> : vector<16x16xf32>
    %50 = tpu.matmul %48, %49, %cst_38 {dimension_numbers = #tpu.dot_dimension_numbers<[1], [0], [0], [1], [0, 0, 1, 1], [], []>} : vector<16x24xf32>, vector<24x16xf32>, vector<16x16xf32> -> vector<16x16xf32>
    %c0_39 = arith.constant 0 : index
    %c0_40 = arith.constant 0 : index
    %51 = vector.load %arg5[%c0_39, %c0_40] : memref<16x1xf32, #tpu.memory_space<vmem>>, vector<16x1xf32>
    %52 = vector.broadcast %51 : vector<16x1xf32> to vector<16x16xf32>
    %53 = arith.addf %50, %52 : vector<16x16xf32>
    %cst_41 = arith.constant 2.000000e+01 : f32
    %54 = vector.broadcast %cst_41 : f32 to vector<16x16xf32>
    %55 = arith.minimumf %53, %54 : vector<16x16xf32>
    %56 = math.exp %55 : vector<16x16xf32>
    %cst_42 = arith.constant 1.000000e+00 : f32
    %57 = vector.broadcast %cst_42 : f32 to vector<16x16xf32>
    %58 = arith.addf %57, %56 : vector<16x16xf32>
    %cst_43 = arith.constant 1.000000e+00 : f32
    %59 = vector.broadcast %cst_43 : f32 to vector<16x16xf32>
    %60 = arith.addf %59, %56 : vector<16x16xf32>
    %61 = arith.mulf %58, %60 : vector<16x16xf32>
    %cst_44 = arith.constant 1.000000e+00 : f32
    %62 = vector.broadcast %cst_44 : f32 to vector<16x16xf32>
    %63 = arith.addf %61, %62 : vector<16x16xf32>
    %64 = tpu.reciprocal %63 {approx = true} : vector<16x16xf32> -> vector<16x16xf32>
    %65 = arith.mulf %63, %64 : vector<16x16xf32>
    %cst_45 = arith.constant 2.000000e+00 : f32
    %66 = vector.broadcast %cst_45 : f32 to vector<16x16xf32>
    %67 = arith.subf %66, %65 : vector<16x16xf32>
    %68 = arith.mulf %64, %67 : vector<16x16xf32>
    %cst_46 = arith.constant 1.000000e+00 : f32
    %69 = vector.broadcast %cst_46 : f32 to vector<16x16xf32>
    %70 = arith.subf %61, %69 : vector<16x16xf32>
    %71 = arith.mulf %53, %70 : vector<16x16xf32>
    %72 = arith.mulf %71, %68 : vector<16x16xf32>
    %cst_47 = arith.constant 2.000000e+01 : f32
    %73 = vector.broadcast %cst_47 : f32 to vector<16x16xf32>
    %74 = arith.cmpf ogt, %53, %73 : vector<16x16xf32>
    %75 = arith.select %74, %53, %72 : vector<16x16xi1>, vector<16x16xf32>
    %c0_48 = arith.constant 0 : index
    %c0_49 = arith.constant 0 : index
    %c0_50 = arith.constant 0 : index
    %76 = vector.load %arg6[%c0_48, %c0_49, %c0_50] : memref<1x16x16xf32, #tpu.memory_space<vmem>>, vector<1x16x16xf32>
    %77 = vector.shape_cast %76 : vector<1x16x16xf32> to vector<16x16xf32>
    %78 = vector.shape_cast %75 : vector<16x16xf32> to vector<1x16x16xf32>
    tpu.vector_store %arg6[%c0_48, %c0_49, %c0_50], %78 {strides = array<i32>} : memref<1x16x16xf32, #tpu.memory_space<vmem>>, vector<1x16x16xf32>,
    return
  }
  func.func @transform_0(%arg0: i32) -> (i32, i32, i32) {
    %c0_i32 = arith.constant 0 : i32
    %c0_i32_0 = arith.constant 0 : i32
    %c0_i32_1 = arith.constant 0 : i32
    return %arg0, %c0_i32, %c0_i32_0 : i32, i32, i32
  }
  func.func @transform_1(%arg0: i32) -> (i32, i32) {
    %c0_i32 = arith.constant 0 : i32
    %c0_i32_0 = arith.constant 0 : i32
    %c0_i32_1 = arith.constant 0 : i32
    return %c0_i32, %c0_i32_0 : i32, i32
  }
  func.func @transform_2(%arg0: i32) -> (i32, i32) {
    %c0_i32 = arith.constant 0 : i32
    %c0_i32_0 = arith.constant 0 : i32
    %c0_i32_1 = arith.constant 0 : i32
    return %c0_i32, %c0_i32_0 : i32, i32
  }
  func.func @transform_3(%arg0: i32) -> (i32, i32) {
    %c0_i32 = arith.constant 0 : i32
    %c0_i32_0 = arith.constant 0 : i32
    %c0_i32_1 = arith.constant 0 : i32
    return %c0_i32, %c0_i32_0 : i32, i32
  }
  func.func @transform_4(%arg0: i32) -> (i32, i32) {
    %c0_i32 = arith.constant 0 : i32
    %c0_i32_0 = arith.constant 0 : i32
    %c0_i32_1 = arith.constant 0 : i32
    return %c0_i32, %c0_i32_0 : i32, i32
  }
  func.func @transform_5(%arg0: i32) -> (i32, i32, i32) {
    %c0_i32 = arith.constant 0 : i32
    %c0_i32_0 = arith.constant 0 : i32
    %c0_i32_1 = arith.constant 0 : i32
    return %arg0, %c0_i32, %c0_i32_0 : i32, i32, i32
  }
}

</mosaic_0001>

<bundles_post_ra>
// kernel: tpu_custom_call.1
= control target key start
LH: loop header
LB: loop body
LE: loop exit
PB: predicated region body
PF: predicated region fallthrough
CT: control target
= control target key end

     0   :  { %10 = vsyncpa [#allocation5], 0  ;;  %s832_s0 = inlined_call_operand.vmem [shape: f32[2,4,16], index: 0, kind: input, shape index: {}]   ;;  %s833_s1 = inlined_call_operand.hbm [shape: f32[8,12], index: 1, kind: input, shape index: {}]   ;;  %s834_s2 = inlined_call_operand.vmem [shape: f32[8,1], index: 2, kind: input, shape index: {}]   ;;  %s835_s3 = inlined_call_operand.vmem [shape: f32[16,24], index: 3, kind: input, shape index: {}]   ;;  %s836_s4 = inlined_call_operand.vmem [shape: f32[16,1], index: 4, kind: input, shape index: {}]   ;;  %s837_s5 = inlined_call_operand.hbm [shape: f32[2,16,16], index: 5, kind: output, shape index: {}]  }
   0x1   :  { %11 = vsyncpa [#allocation6], 0 }
   0x2   :  { %13 = vsyncpa [#allocation6 + $0x1], 0  ;;  %s721_s18 = smov 0   ;;  %s723_s19 = smov 0  }
   0x3   :  { %s725_s20 = smov 0   ;;  %s727_s21 = smov 0  }
   0x4 LB: > { %s742_s22 = sadd.s32 4294967295, %s682_s21   ;;  %s491_s23 = sadd.s32 4294967294, %s682_s21   ;;  %s682_s21 = sphi %s727_s21, %s843_s21   ;;  %s678_s20 = sphi %s725_s20, %s842_s20   ;;  %s674_s19 = sphi %s723_s19, %s841_s19   ;;  %s670_s18 = sphi %s721_s18, %s840_s18  }
   0x5   : > { %s746_s24 = sadd.s32 1, %s682_s21   ;;  %s136_s25 = sadd.s32 1, %s678_s20 }
   0x6   : > { %s133_s26 = ssub.s32 %s682_s21, %s746_s24  ;;  %p146_p0 = scmp.ne.s32.totalorder %s678_s20, %s674_s19 }
   0x7   : > { %p134_p1 = scmp.eq.s32.totalorder %s133_s26, 0  ;;  %p147_p2 = scmp.eq.s32.totalorder %s742_s22, 1 }
   0x8   : > { %p152_p3 = scmp.ne.s32.totalorder %s674_s19, %s670_s18  ;;  %p153_p4 = scmp.eq.s32.totalorder %s491_s23, 1 }
   0x9   : > { %s757_s27 = scalar_select %p134_p1, %s678_s20, %s136_s25  }
   0xa   : > { %p759_p5 = por %p147_p2, %p146_p0  ;;  %p763_p6 = por %p153_p4, %p152_p3 }
   0xb   : > { %p492_p7 = scmp.ge.s32.totalorder %s682_s21, 1  ;;  %p160_p8 = scmp.lt.s32.totalorder %s682_s21, 3 }
   0xc   : > { %p529_p9 = scmp.eq.s32.totalorder %s742_s22, 0  ;;  %s172_s7 = sshll.u32 %s833_s1, 4  ;;  %s173_s7 = int_to_ptr.hbm [resolvable:$true] %s172_s7 }
   0xd   : > { %p161_p10 = pnand %p492_p7, %p160_p8  ;;  %s684_s8 = smov [#allocation4]  }
   0xe   : > { %s174_s9 = sshll.u32 %s684_s8, 4  ;;  %s175_s9 = int_to_ptr.vmem [resolvable:$true] %s174_s9 }
   0xf   : > { %p521_p11 = pneg %p161_p10  ;;  %203 = sbr.rel (%p161_p10) target bundleno = 620 (0x26c), region = 40 }
  0x11   : > { %p522_p12 = pnand %p529_p9, %p521_p11 }
  0x13   : > { %524 = dma.hbm_to_vmem [thread:$0]  (!%p522_p12), %s173_s7, 128, %s175_s9, [#allocation5]  }
  0x14   : > { %661 = dma.done.wait (%p529_p9), [#allocation5], 128  }
  0x15   : > { %663 = vsyncadd (%p529_p9), [#allocation5], 4294967168  ;;  %p231_p13 = scmp.lt.s32.totalorder %s742_s22, 1  ;;  %vm246_vm0 = vcmask 126072   ;;  %v685_v0 = vmov 0.0   ;;  %vm244_vm1 = vcmask 125952  }
  0x16   : > { %247 = vst.msk [vmem:[#allocation2 + $0x8] sm:$0xf] %vm246_vm0, %v685_v0  ;;  %s686_s15 = smov 127   ;;  %s687_s16 = smov 1   ;;  %vm236_vm2 = vcmask 3072   ;;  %v256_v2 = vld [vmem:[%s834_s2] sm:$0xff] }
  0x17   : > { %s232_s10 = scalar_select %p231_p13, %s742_s22, 1  ;;  %237 = vst.msk [vmem:[#allocation2] sm:$0xf] %vm236_vm2, %v685_v0  ;;  %v688_v3 = vmov 0   ;;  %vm251_vm3 = vcmask 117760   ;;  %vm242_vm4 = vcmask 125960  }
  0x18   : > { %571 = vset.pattern.permute.xlu1 %v688_v3  ;;  %573 = vset.pattern.permute.xlu0 %v688_v3  ;;  %vm266_vm5 = vcmask 1043456   ;;  %v253_v7 = vld [vmem:[#allocation4] sm:$0xff]  ;;  %vm262_vm6 = vcmask 97280   ;;  %vm305_vm7 = vcmask 7168   ;;  %vm313_vm8 = vcmask 130048   ;;  %v327_v28 = vld [vmem:[%s836_s4] sm:$0xff] }
  0x19   : > { %s498_s11 = sshll.u32 %s232_s10, 2  ;;  %259 = vperm.xlu1 %571, %v256_v2   ;;  %572 = vset.pattern.permute.xlu2 %v688_v3  ;;  %306 = vst.msk [vmem:[#allocation3] sm:$0xff] %vm305_vm7, %v685_v0  ;;  %vm315_vm10 = vcmask 130168   ;;  %vm311_vm11 = vcmask 130056   ;;  %v328_v27 = vld [vmem:[%s836_s4 + $0x8] sm:$0xff]  ;;  %vm320_vm12 = vcmask 121856  }
  0x1a   : > { %s234_s14 = scalar_lea.vmem %s832_s0, %s498_s11  ;;  %316 = vst.msk [vmem:[#allocation3 + $0x10] sm:$0xff] %vm315_vm10, %v685_v0  ;;  %v322_v32 = vld [vmem:[%s835_s3] sm:$0xff]  ;;  %vm339_vm13 = vcmask 195584   ;;  %v323_v33 = vld [vmem:[%s835_s3 + $0x8] sm:$0xff]  ;;  %s228_s11 = sand.u32 1, %s674_s19  }
  0x1b   : > { %v235_v1 = vld [vmem:[%s234_s14] sm:$0xf]  ;;  %s497_s12 = sshll.u32 %s228_s11, 4  ;;  %s511_s13 = sshll.u32 %s742_s22, 4 }
  0x1c   : > { %248 = vrot.lane.b32.xlu0 %v235_v1, %s686_s15  ;;  %245 = vst.msk [vmem:[#allocation2 + $0x4] sm:$0xf] %vm244_vm1, %v235_v1  ;;  %s230_s17 = scalar_lea.vmem [#allocation7], %s497_s12  ;;  %s402_s22 = scalar_lea.sflag [#allocation6], %s228_s11 }
  0x1d   : > { %s414_s23 = sshll.u32 %s230_s17, 4  ;;  %s636_s8 = scalar_lea.hbm %s837_s5, 32  ;;  %s415_s23 = int_to_ptr.vmem [resolvable:$true] %s414_s23 }
  0x24   : > { %239 = vrot.lane.b32.xlu0 %v235_v1, %s687_s16 }
  0x2c   : > { %336 = vperm.xlu0 %573, %v328_v27  }
  0x8b   : > { %v260_v9 = vpop.permute.xlu1 %259 }
  0x8e   : > { %v249_v4 = vpop.permute.xlu0 %248 }
  0x8f   : > { %252 = vst.msk [vmem:[#allocation2 + $0x8] sm:$0xf] %vm251_vm3, %v249_v4 }
  0x96   : > { %v240_v5 = vpop.permute.xlu0 %239  ;;  %v255_v6 = vld [vmem:[#allocation2 + $0x8] sm:$0xf] }
  0x97   : > { %243 = vst.msk [vmem:[#allocation2] sm:$0xf] %vm242_vm4, %v240_v5  ;;  %499 = vmatpush.msk.msra.mxu0 %vm266_vm5, %v255_v6 }
  0x9e   : > { %v254_v8 = vld [vmem:[#allocation2] sm:$0xff]  ;;  %v337_v39 = vpop.permute.xlu0 %336 }
  0x9f   : > { %285 = vmatpush.msra.mxu0 %v254_v8 }
  0xa0   : > { %500 = vmatmul.msk.f32.vlgmr.msra.gmra.mxu0 %vm262_vm6, %v253_v7 }
 0x11d   : > { %v287_v10 = vpop.f32.mrf.mxu0 }
 0x11e   : > { %v288_v11 = vadd.f32 %v287_v10, %v260_v9 }
 0x120   : > { %v290_v12 = vmin.f32 %v288_v11, 20.0  ;;  %vm303_vm9 = vcmp.gt.f32.partialorder %v288_v11, 20.0 }
 0x122   : > { %v291_v13 = vmul.f32 1.442695, %v290_v12 }
 0x124   : > { %574 = vpow2.f32 %v291_v13 }
 0x12a   : > { %v575_v14 = vpop.eup %574 }
 0x12b   : > { %v293_v15 = vadd.f32 1.0, %v575_v14 }
 0x12d   : > { %v294_v16 = vmul.f32 %v293_v15, %v293_v15 }
 0x12f   : > { %v295_v17 = vadd.f32 1.0, %v294_v16  ;;  %v501_v20 = vadd.f32 -1.0, %v294_v16 }
 0x131   : > { %576 = vrcp.f32 %v295_v17  ;;  %v301_v23 = vmul.f32 %v501_v20, %v288_v11 }
 0x137   : > { %v577_v18 = vpop.eup %576 }
 0x138   : > { %v297_v19 = vmul.f32 %v577_v18, %v295_v17 }
 0x13a   : > { %v298_v21 = vsub.f32 2.0, %v297_v19 }
 0x13c   : > { %v299_v22 = vmul.f32 %v577_v18, %v298_v21 }
 0x13e   : > { %v302_v24 = vmul.f32 %v301_v23, %v299_v22 }
 0x140   : > { %v304_v25 = vsel %vm303_vm9, %v288_v11, %v302_v24 }
 0x141   : > { %308 = vrot.lane.b32.xlu2 %v304_v25, %s687_s16  ;;  %314 = vst.msk [vmem:[#allocation3 + $0x8] sm:$0xff] %vm313_vm8, %v304_v25  ;;  %317 = vrot.lane.b32.xlu1 %v304_v25, %s686_s15  ;;  %s413_s16 = scalar_lea.hbm %s837_s5, %s511_s13 }
 0x142   : > { %s416_s25 = sshll.u32 %s413_s16, 4  ;;  %s417_s25 = int_to_ptr.hbm [resolvable:$true] %s416_s25 }
 0x143   : > { %s630_s26 = sshra.s32 %s417_s25, 4  ;;  %s631_s26 = int_to_ptr.hbm [resolvable:$true] %s630_s26 }
 0x144   : > { %s632_s30 = scalar_lea.hbm %s631_s26, 16  ;;  %p637_p3 = scmp.lt.s32.totalorder %s631_s26, %s837_s5 }
 0x145   : > { %p633_p0 = scmp.ne.s32.totalorder %s631_s26, %s632_s30  ;;  %p638_p4 = scmp.lt.s32.totalorder %s636_s8, %s632_s30 }
 0x147   : > { %p634_p1 = pnand %p633_p0, %p759_p5  ;;  %p639_p7 = por %p638_p4, %p637_p3 }
 0x148   : > { %v325_v31 = vld [vmem:[#allocation3 + $0x8] sm:$0xff] }
 0x149   : > { %331 = vperm.xlu2 %572, %v327_v28   ;;  %p635_p2 = pneg %p634_p1 }
 0x14b   : > { %p640_p8 = pnand %p639_p7, %p635_p2 }
 0x19b   : > { %v309_v26 = vpop.permute.xlu2 %308 }
 0x19c   : > { %312 = vst.msk [vmem:[#allocation3] sm:$0xff] %vm311_vm11, %v309_v26 }
 0x1a3   : > { %v324_v34 = vld [vmem:[#allocation3] sm:$0xff]  ;;  %v332_v35 = vpop.permute.xlu2 %331 }
 0x1b3   : > { %v318_v29 = vpop.permute.xlu1 %317 }
 0x1b4   : > { %321 = vst.msk [vmem:[#allocation3 + $0x10] sm:$0xff] %vm320_vm12, %v318_v29 }
 0x1bb   : > { %v326_v30 = vld [vmem:[#allocation3 + $0x10] sm:$0xff] }
 0x1bc   : > { %359 = vmatpush.msra.mxu1 %v326_v30  ;;  %512 = vmatpush.msra.mxu2 %v326_v30 }
 0x1be   : > { %360 = vmatpush.msra.mxu1 %v325_v31  ;;  %513 = vmatpush.msra.mxu2 %v325_v31 }
 0x1c0   : > { %361 = vmatpush.msra.mxu1 %v324_v34  ;;  %514 = vmatpush.msra.mxu2 %v324_v34 }
 0x1c1   : > { %502 = vmatmul.msk.f32.vlgmr.msra.gmra.mxu1 %vm339_vm13, %v322_v32  ;;  %503 = vmatmul.msk.f32.vlgmr.msra.gmra.mxu2 %vm339_vm13, %v323_v33 }
 0x23e   : > { %v363_v36 = vpop.f32.mrf.mxu1 }
 0x23f   : > { %v364_v37 = vadd.f32 %v363_v36, %v332_v35 }
 0x241   : > { %v369_v38 = vmin.f32 %v364_v37, 20.0  ;;  %vm395_vm14 = vcmp.gt.f32.partialorder %v364_v37, 20.0 }
 0x243   : > { %v371_v40 = vmul.f32 1.442695, %v369_v38 }
 0x244   : > { %v366_v41 = vpop.f32.mrf.mxu2 }
 0x245   : > { %578 = vpow2.f32 %v371_v40  ;;  %v367_v42 = vadd.f32 %v366_v41, %v337_v39 }
 0x247   : > { %v370_v43 = vmin.f32 %v367_v42, 20.0  ;;  %vm396_vm15 = vcmp.gt.f32.partialorder %v367_v42, 20.0 }
 0x249   : > { %v373_v44 = vmul.f32 1.442695, %v370_v43 }
 0x24b   : > { %v579_v45 = vpop.eup %578  ;;  %580 = vpow2.f32 %v373_v44 }
 0x24c   : > { %v375_v46 = vadd.f32 1.0, %v579_v45 }
 0x24e   : > { %v377_v47 = vmul.f32 %v375_v46, %v375_v46 }
 0x250   : > { %v379_v48 = vadd.f32 1.0, %v377_v47  ;;  %v504_v55 = vadd.f32 -1.0, %v377_v47 }
 0x251   : > { %v581_v49 = vpop.eup %580 }
 0x252   : > { %582 = vrcp.f32 %v379_v48  ;;  %v376_v50 = vadd.f32 1.0, %v581_v49  ;;  %v391_v58 = vmul.f32 %v504_v55, %v364_v37 }
 0x254   : > { %v378_v51 = vmul.f32 %v376_v50, %v376_v50 }
 0x256   : > { %v380_v52 = vadd.f32 1.0, %v378_v51  ;;  %v505_v62 = vadd.f32 -1.0, %v378_v51 }
 0x258   : > { %v583_v53 = vpop.eup %582  ;;  %584 = vrcp.f32 %v380_v52  ;;  %v392_v2 = vmul.f32 %v505_v62, %v367_v42 }
 0x259   : > { %v383_v54 = vmul.f32 %v583_v53, %v379_v48 }
 0x25b   : > { %v385_v56 = vsub.f32 2.0, %v383_v54 }
 0x25d   : > { %v387_v57 = vmul.f32 %v583_v53, %v385_v56 }
 0x25e   : > { %v585_v59 = vpop.eup %584 }
 0x25f   : > { %v393_v60 = vmul.f32 %v391_v58, %v387_v57  ;;  %v384_v61 = vmul.f32 %v585_v59, %v380_v52 }
 0x261   : > { %v397_v63 = vsel %vm395_vm14, %v364_v37, %v393_v60  ;;  %v386_v0 = vsub.f32 2.0, %v384_v61 }
 0x262   : > { %399 = vst.msk [vmem:[%s230_s17] sm:$0xff] %vm313_vm8, %v397_v63 }
 0x263   : > { %v388_v1 = vmul.f32 %v585_v59, %v386_v0 }
 0x265   : > { %v394_v3 = vmul.f32 %v392_v2, %v388_v1 }
 0x267   : > { %v398_v4 = vsel %vm396_vm15, %v367_v42, %v394_v3 }
 0x268   : > { %400 = vst.msk [vmem:[%s230_s17 + $0x8] sm:$0xff] %vm313_vm8, %v398_v4 }
 0x269   : > { %643 = shalt.err (!%p640_p8)
}
 0x26a   : > { %s689_s11 = smov 128   ;;  %s690_s12 = smov 8  }
 0x26b   : > { %519 = dma.vmem_to_hbm [thread:$0]  (%p759_p5), %s415_s23, 256, %s417_s25, %s402_s22, %s689_s11, %s689_s11, %s690_s12  }
 0x26c PF: > { %p531_p9 = scmp.ge.s32.totalorder %s682_s21, 2  ;;  %s431_s13 = sand.u32 1, %s670_s18  }
 0x26d   : > { %s432_s14 = scalar_lea.sflag [#allocation6], %s431_s13 }
 0x26e   : > { %p526_p10 = pnand %p531_p9, %p763_p6 }
 0x270   : > { %p527_p11 = pneg %p526_p10 }
 0x272   : > { %665 = dma.done.wait (%p527_p11), %s432_s14, 256  }
 0x273   : > { %667 = vsyncadd (%p527_p11), %s432_s14, 4294967040  ;;  %p16_p12 = scmp.ge.s32.totalorder %s746_s24, 4   ;;  %s840_s18 = smov %s674_s19 }
 0x274   : > { %s841_s19 = smov %s678_s20  ;;  %s842_s20 = smov %s757_s27 }
 0x275   : > { %s843_s21 = smov %s746_s24  ;;  %18 = sbr.rel (!%p16_p12) target bundleno = 4 (0x4), region = 80 }
 0x27a   :  { %438 = vsyncpa [#allocation5], 1 }
 0x27b   :  { %440 = vsyncpa [#allocation5 + $0x1], 1 }
 0x27c   :  { %441 = vsyncpa [#allocation6], 1 }
 0x27d   :  { %443 = vsyncpa [#allocation6 + $0x1], 1 }

</bundles_post_ra>
